<compile_context>
chip_gen: v7x
topology: tpu7x:2x2x1
jax: 0.10.0
libtpu: 0.0.40
codegen_flags: <defaults>
</compile_context>

<pallas_src>
import functools
import math

import jax
import jax.numpy as jnp
from jax import lax
from jax.experimental import pallas as pl
from jax.experimental.pallas import tpu as pltpu


def _mem_attention_kernel(x_ref, mask_ref,
                          wq_ref, bq_ref, wk_ref, bk_ref, wv_ref, bv_ref,
                          wo_ref, bo_ref, lnw_ref, lnb_ref,
                          o_ref,
                          k_ref, v_ref, ctx_ref,
                          *, num_heads, head_dim, q_tile, eps):
    # grid = (batch, query_tile); leading size-1 batch dim squeezed, so:
    #   x_ref    : (L, D)   f32   full sequence (needed once for K / V)
    #   mask_ref : (TQ, L)  int8  query-tile rows of the attention mask
    #   o_ref    : (TQ, D)  f32
    #   k_ref    : (L, D)   bf16  VMEM scratch, persists across query tiles
    #   v_ref    : (L, D)   bf16  VMEM scratch, persists across query tiles
    #   ctx_ref  : (TQ, D)  bf16  VMEM scratch (per-head contexts, concat-free)
    TQ = q_tile
    t = pl.program_id(1)
    q_start = pl.multiple_of(t * TQ, TQ)

    # ---- K / V projections: once per batch, persisted in bf16 scratch -------
    @pl.when(t == 0)
    def _():
        x_full_bf = x_ref[...].astype(jnp.bfloat16)                     # (L, D)
        k = jnp.dot(x_full_bf, wk_ref[...],
                    preferred_element_type=jnp.float32) + bk_ref[...]
        v = jnp.dot(x_full_bf, wv_ref[...],
                    preferred_element_type=jnp.float32) + bv_ref[...]
        k_ref[...] = k.astype(jnp.bfloat16)
        v_ref[...] = v.astype(jnp.bfloat16)

    # ---- Q projection for this query tile (scale folded into Q) -------------
    x_q = x_ref[pl.ds(q_start, TQ), :]                                   # (TQ, D) f32
    q = jnp.dot(x_q.astype(jnp.bfloat16), wq_ref[...],
                preferred_element_type=jnp.float32) + bq_ref[...]
    q = (q * (1.0 / math.sqrt(head_dim))).astype(jnp.bfloat16)          # (TQ, D) bf16

    valid = mask_ref[...] != 0                                          # (TQ, L) bool

    # ---- per-head attention; contexts written into lane-slices of ctx_ref ---
    for h in range(num_heads):                                          # static unroll
        lo = h * head_dim
        hi = lo + head_dim
        qh = q[:, lo:hi]                                                # (TQ, hd) bf16
        kh = k_ref[:, lo:hi]                                            # (L,  hd) bf16
        vh = v_ref[:, lo:hi]                                            # (L,  hd) bf16

        # scores = qh @ kh^T (already scaled) without an explicit transpose
        s = lax.dot_general(qh, kh, (((1,), (1,)), ((), ())),
                            preferred_element_type=jnp.float32)         # (TQ, L)
        s = jnp.where(valid, s, s - 10000.0)                            # fused mask bias

        m = jnp.max(s, axis=-1, keepdims=True)
        e = jnp.exp(s - m)
        denom = jnp.sum(e, axis=-1, keepdims=True)
        p = (e * pl.reciprocal(denom, approx=True)).astype(jnp.bfloat16)

        ctx_ref[:, lo:hi] = jnp.dot(
            p, vh, preferred_element_type=jnp.float32).astype(jnp.bfloat16)

    # ---- single full-K output projection + residual + LayerNorm (f32) -------
    out = jnp.dot(ctx_ref[...], wo_ref[...],
                  preferred_element_type=jnp.float32) + bo_ref[...]
    h_res = out + x_q
    u = jnp.mean(h_res, axis=-1, keepdims=True)
    var = jnp.mean((h_res - u) ** 2, axis=-1, keepdims=True)
    y = (h_res - u) * lax.rsqrt(var + eps)
    o_ref[...] = (lnw_ref[...] * y + lnb_ref[...]).astype(o_ref.dtype)


def _choose_q_tile(L):
    # Prefer 128 for long sequences (v7x VMEM budget), 256 otherwise.
    if L >= 1024 and L % 128 == 0:
        return 128
    for t in (256, 128):
        if L % t == 0:
            return t
    return L


def mem_attention(x, mask, params, *, num_heads, eps=1e-12):
    """x: (N, L, D) f32, mask: (N, L, L) (1 = attend, bool/int8 preferred).

    Returns (N, L, D) f32.
    """
    N, L, D = x.shape
    head_dim = D // num_heads
    tq = _choose_q_tile(L)
    n_q = L // tq

    kernel = functools.partial(_mem_attention_kernel,
                               num_heads=num_heads, head_dim=head_dim,
                               q_tile=tq, eps=eps)

    # bf16 weights: half the DMA, full-rate MXU. Biases / LN params stay f32.
    wq = params["wq"].astype(jnp.bfloat16)
    wk = params["wk"].astype(jnp.bfloat16)
    wv = params["wv"].astype(jnp.bfloat16)
    wo = params["wo"].astype(jnp.bfloat16)

    # Accept int8/bool masks directly (avoid an extra f32 (N,L,L) pass).
    if mask.dtype == jnp.int8:
        mask_i8 = mask
    elif mask.dtype == jnp.bool_:
        mask_i8 = mask.astype(jnp.int8)
    else:
        mask_i8 = (mask != 0).astype(jnp.int8)

    # Grid-invariant weights/biases: single-buffered (constant index_map).
    wspec = pl.BlockSpec((D, D), lambda n, t: (0, 0), pipeline_mode=pl.Buffered(1))
    bspec = pl.BlockSpec((1, D), lambda n, t: (0, 0), pipeline_mode=pl.Buffered(1))

    # Explicit VMEM budget (resident set + temporaries + slack), capped at the
    # smallest physical VMEM across chips (64 MiB on v7x).
    est_bytes = (2 * L * D * 4          # x, double-buffered
                 + 2 * tq * L * 1       # mask tiles, double-buffered
                 + 4 * D * D * 2        # bf16 weights, single-buffered
                 + 6 * D * 4            # biases + LN params
                 + 2 * tq * D * 4       # output tiles, double-buffered
                 + 2 * L * D * 2        # K/V bf16 scratch
                 + tq * D * 2           # ctx bf16 scratch
                 + 4 * tq * L * 4       # score / prob temporaries headroom
                 + (4 << 20))           # slack
    vmem_limit = int(min(max(est_bytes, 32 << 20), 64 << 20))

    cost = pl.CostEstimate(
        flops=int(N * (8 * L * D * D + 4 * L * L * D)),
        transcendentals=int(N * num_heads * L * L),
        bytes_accessed=int(2 * N * L * D * 4 + N * L * L + 4 * D * D * 2),
    )

    return pl.pallas_call(
        kernel,
        out_shape=jax.ShapeDtypeStruct((N, L, D), jnp.float32),
        grid_spec=pltpu.PrefetchScalarGridSpec(
            num_scalar_prefetch=0,
            grid=(N, n_q),
            in_specs=[
                pl.BlockSpec((pl.Squeezed(), L, D), lambda n, t: (n, 0, 0)),   # x (full seq)
                pl.BlockSpec((pl.Squeezed(), tq, L), lambda n, t: (n, t, 0)),  # mask (q tile)
                wspec, bspec,   # query
                wspec, bspec,   # key
                wspec, bspec,   # value
                wspec, bspec,   # output dense
                bspec, bspec,   # LayerNorm weight, bias
            ],
            out_specs=pl.BlockSpec((pl.Squeezed(), tq, D), lambda n, t: (n, t, 0)),
            scratch_shapes=[
                pltpu.VMEM((L, D), jnp.bfloat16),    # K (persists across q tiles)
                pltpu.VMEM((L, D), jnp.bfloat16),    # V (persists across q tiles)
                pltpu.VMEM((tq, D), jnp.bfloat16),   # per-tile context
            ],
        ),
        compiler_params=pltpu.CompilerParams(
            # q-tile axis must be sequential: K/V scratch is filled at t == 0.
            dimension_semantics=("parallel", "arbitrary"),
            vmem_limit_bytes=vmem_limit,
        ),
        cost_estimate=cost,
    )(x, mask_i8,
      wq, params["bq"], wk, params["bk"],
      wv, params["bv"], wo, params["bo"],
      params["ln_w"], params["ln_b"])


def mem_attention_ref(x, mask, params, *, num_heads, eps=1e-12):
    """Pure-JAX f32 reference (mirrors the PyTorch forward, eval mode)."""
    N, L, D = x.shape
    hd = D // num_heads
    mask_bias = (1.0 - mask[:, None, :, :]) * (-10000.0)          # (N,1,L,L)
    q = x @ params["wq"] + params["bq"]
    k = x @ params["wk"] + params["bk"]
    v = x @ params["wv"] + params["bv"]

    def split(t):  # (N,L,D) -> (N,H,L,hd)
        return t.reshape(N, L, num_heads, hd).transpose(0, 2, 1, 3)

    qh, kh, vh = split(q), split(k), split(v)
    scores = jnp.einsum("nhqd,nhkd->nhqk", qh, kh) / math.sqrt(hd) + mask_bias
    probs = jax.nn.softmax(scores, axis=-1)
    ctx = jnp.einsum("nhqk,nhkd->nhqd", probs, vh)
    ctx = ctx.transpose(0, 2, 1, 3).reshape(N, L, D)
    out = ctx @ params["wo"] + params["bo"]
    h = out + x
    u = jnp.mean(h, -1, keepdims=True)
    s = jnp.mean((h - u) ** 2, -1, keepdims=True)
    y = (h - u) / jnp.sqrt(s + eps)
    return params["ln_w"] * y + params["ln_b"]


def init_params(key, hidden_size):
    """Deterministic init matching nn.Linear default (uniform +-1/sqrt(in))."""
    D = hidden_size
    bound = 1.0 / math.sqrt(D)
    keys = jax.random.split(key, 8)

    def lin(kw, kb):
        # stored pre-transposed: (in, out)
        w = jax.random.uniform(kw, (D, D), jnp.float32, -bound, bound)
        b = jax.random.uniform(kb, (1, D), jnp.float32, -bound, bound)
        return w, b

    wq, bq = lin(keys[0], keys[1])
    wk, bk = lin(keys[2], keys[3])
    wv, bv = lin(keys[4], keys[5])
    wo, bo = lin(keys[6], keys[7])
    return dict(wq=wq, bq=bq, wk=wk, bk=bk, wv=wv, bv=bv, wo=wo, bo=bo,
                ln_w=jnp.ones((1, D), jnp.float32),
                ln_b=jnp.zeros((1, D), jnp.float32))


if __name__ == "__main__":
    N, L, D, H = 2, 8, 32, 4
    key = jax.random.PRNGKey(0)
    k_x, k_m, k_p = jax.random.split(key, 3)

    x = jax.random.normal(k_x, (N, L, D), jnp.float32)
    # binary attention mask (N, Lq, L), 1 = attend, 0 = masked; keep diagonal valid
    mask_bool = (jax.random.uniform(k_m, (N, L, L)) > 0.3) | jnp.eye(L, dtype=bool)[None]

    params = init_params(k_p, D)

    out = mem_attention(x, mask_bool, params, num_heads=H)
    out = jax.block_until_ready(out)

    ref = mem_attention_ref(x, mask_bool.astype(jnp.float32), params, num_heads=H)
    assert out.shape == (N, L, D)
    # bf16 MXU operands + approx reciprocal -> compare with bf16-level tolerance
    max_err = jnp.max(jnp.abs(out - ref))
    assert jnp.allclose(out, ref, atol=3e-2, rtol=3e-2), f"max abs err {max_err}"

    print("KERNEL_OK")
</pallas_src>

<mosaic_0001>
module attributes {stable_mosaic.version = 11 : i64} {
  func.func @_mem_attention_kernel(%arg0: i32, %arg1: i32, %arg2: memref<1x8x32xf32, #tpu.memory_space<vmem>>, %arg3: memref<1x8x8xi8, #tpu.memory_space<vmem>>, %arg4: memref<32x32xbf16, #tpu.memory_space<vmem>>, %arg5: memref<1x32xf32, #tpu.memory_space<vmem>>, %arg6: memref<32x32xbf16, #tpu.memory_space<vmem>>, %arg7: memref<1x32xf32, #tpu.memory_space<vmem>>, %arg8: memref<32x32xbf16, #tpu.memory_space<vmem>>, %arg9: memref<1x32xf32, #tpu.memory_space<vmem>>, %arg10: memref<32x32xbf16, #tpu.memory_space<vmem>>, %arg11: memref<1x32xf32, #tpu.memory_space<vmem>>, %arg12: memref<1x32xf32, #tpu.memory_space<vmem>>, %arg13: memref<1x32xf32, #tpu.memory_space<vmem>>, %arg14: memref<1x8x32xf32, #tpu.memory_space<vmem>>, %arg15: memref<8x32xbf16, #tpu.memory_space<vmem>>, %arg16: memref<8x32xbf16, #tpu.memory_space<vmem>>, %arg17: memref<8x32xbf16, #tpu.memory_space<vmem>>) attributes {dimension_semantics = [#tpu.dimension_semantics<parallel>, #tpu.dimension_semantics<arbitrary>], iteration_bounds = array<i64: 2, 1>, scalar_prefetch = 0 : i64, scratch_operands = 3 : i64, tpu.core_type = #tpu.core_type<tc>, window_params = [{transform_indices = @transform_0, window_bounds = array<i64: 1, 8, 32>}, {transform_indices = @transform_1, window_bounds = array<i64: 1, 8, 8>}, {pipeline_mode = #tpu.pipeline_mode<synchronous>, transform_indices = @transform_2, window_bounds = array<i64: 32, 32>}, {pipeline_mode = #tpu.pipeline_mode<synchronous>, transform_indices = @transform_3, window_bounds = array<i64: 1, 32>}, {pipeline_mode = #tpu.pipeline_mode<synchronous>, transform_indices = @transform_4, window_bounds = array<i64: 32, 32>}, {pipeline_mode = #tpu.pipeline_mode<synchronous>, transform_indices = @transform_5, window_bounds = array<i64: 1, 32>}, {pipeline_mode = #tpu.pipeline_mode<synchronous>, transform_indices = @transform_6, window_bounds = array<i64: 32, 32>}, {pipeline_mode = #tpu.pipeline_mode<synchronous>, transform_indices = @transform_7, window_bounds = array<i64: 1, 32>}, {pipeline_mode = #tpu.pipeline_mode<synchronous>, transform_indices = @transform_8, window_bounds = array<i64: 32, 32>}, {pipeline_mode = #tpu.pipeline_mode<synchronous>, transform_indices = @transform_9, window_bounds = array<i64: 1, 32>}, {pipeline_mode = #tpu.pipeline_mode<synchronous>, transform_indices = @transform_10, window_bounds = array<i64: 1, 32>}, {pipeline_mode = #tpu.pipeline_mode<synchronous>, transform_indices = @transform_11, window_bounds = array<i64: 1, 32>}, {transform_indices = @transform_12, window_bounds = array<i64: 1, 8, 32>}]} {
    %c8_i32 = arith.constant 8 : i32
    %0 = arith.muli %arg1, %c8_i32 : i32
    %1 = tpu.assume_multiple %0, 8 : i32
    %c0_i32 = arith.constant 0 : i32
    %2 = arith.cmpi eq, %arg1, %c0_i32 : i32
    %3 = arith.extui %2 : i1 to i32
    %c0_i32_0 = arith.constant 0 : i32
    %4 = arith.cmpi ne, %3, %c0_i32_0 : i32
    scf.if %4 {
      %c0_70 = arith.constant 0 : index
      %c0_71 = arith.constant 0 : index
      %c0_72 = arith.constant 0 : index
      %139 = vector.load %arg2[%c0_70, %c0_71, %c0_72] : memref<1x8x32xf32, #tpu.memory_space<vmem>>, vector<1x8x32xf32>
      %140 = vector.shape_cast %139 : vector<1x8x32xf32> to vector<8x32xf32>
      %141 = arith.truncf %140 : vector<8x32xf32> to vector<8x32xbf16>
      %c0_73 = arith.constant 0 : index
      %c0_74 = arith.constant 0 : index
      %142 = vector.load %arg6[%c0_73, %c0_74] : memref<32x32xbf16, #tpu.memory_space<vmem>>, vector<32x32xbf16>
      %cst_75 = arith.constant dense<0.000000e+00> : vector<8x32xf32>
      %143 = tpu.matmul %141, %142, %cst_75 {dimension_numbers = #tpu.dot_dimension_numbers<[1], [0], [0], [1], [0, 0, 1, 1], [], []>} : vector<8x32xbf16>, vector<32x32xbf16>, vector<8x32xf32> -> vector<8x32xf32>
      %c0_76 = arith.constant 0 : index
      %c0_77 = arith.constant 0 : index
      %144 = vector.load %arg7[%c0_76, %c0_77] : memref<1x32xf32, #tpu.memory_space<vmem>>, vector<1x32xf32>
      %145 = vector.broadcast %144 : vector<1x32xf32> to vector<8x32xf32>
      %146 = arith.addf %143, %145 : vector<8x32xf32>
      %c0_78 = arith.constant 0 : index
      %c0_79 = arith.constant 0 : index
      %147 = vector.load %arg8[%c0_78, %c0_79] : memref<32x32xbf16, #tpu.memory_space<vmem>>, vector<32x32xbf16>
      %cst_80 = arith.constant dense<0.000000e+00> : vector<8x32xf32>
      %148 = tpu.matmul %141, %147, %cst_80 {dimension_numbers = #tpu.dot_dimension_numbers<[1], [0], [0], [1], [0, 0, 1, 1], [], []>} : vector<8x32xbf16>, vector<32x32xbf16>, vector<8x32xf32> -> vector<8x32xf32>
      %c0_81 = arith.constant 0 : index
      %c0_82 = arith.constant 0 : index
      %149 = vector.load %arg9[%c0_81, %c0_82] : memref<1x32xf32, #tpu.memory_space<vmem>>, vector<1x32xf32>
      %150 = vector.broadcast %149 : vector<1x32xf32> to vector<8x32xf32>
      %151 = arith.addf %148, %150 : vector<8x32xf32>
      %152 = arith.truncf %146 : vector<8x32xf32> to vector<8x32xbf16>
      %c0_83 = arith.constant 0 : index
      %c0_84 = arith.constant 0 : index
      %153 = vector.load %arg15[%c0_83, %c0_84] : memref<8x32xbf16, #tpu.memory_space<vmem>>, vector<8x32xbf16>
      tpu.vector_store %arg15[%c0_83, %c0_84], %152 {strides = array<i32>} : memref<8x32xbf16, #tpu.memory_space<vmem>>, vector<8x32xbf16>,
      %154 = arith.truncf %151 : vector<8x32xf32> to vector<8x32xbf16>
      %c0_85 = arith.constant 0 : index
      %c0_86 = arith.constant 0 : index
      %155 = vector.load %arg16[%c0_85, %c0_86] : memref<8x32xbf16, #tpu.memory_space<vmem>>, vector<8x32xbf16>
      tpu.vector_store %arg16[%c0_85, %c0_86], %154 {strides = array<i32>} : memref<8x32xbf16, #tpu.memory_space<vmem>>, vector<8x32xbf16>,
    } else {
    }
    %c0 = arith.constant 0 : index
    %5 = arith.index_cast %1 : i32 to index
    %c0_1 = arith.constant 0 : index
    %6 = vector.load %arg2[%c0, %5, %c0_1] : memref<1x8x32xf32, #tpu.memory_space<vmem>>, vector<1x8x32xf32>
    %7 = vector.shape_cast %6 : vector<1x8x32xf32> to vector<8x32xf32>
    %8 = arith.truncf %7 : vector<8x32xf32> to vector<8x32xbf16>
    %c0_2 = arith.constant 0 : index
    %c0_3 = arith.constant 0 : index
    %9 = vector.load %arg4[%c0_2, %c0_3] : memref<32x32xbf16, #tpu.memory_space<vmem>>, vector<32x32xbf16>
    %cst = arith.constant dense<0.000000e+00> : vector<8x32xf32>
    %10 = tpu.matmul %8, %9, %cst {dimension_numbers = #tpu.dot_dimension_numbers<[1], [0], [0], [1], [0, 0, 1, 1], [], []>} : vector<8x32xbf16>, vector<32x32xbf16>, vector<8x32xf32> -> vector<8x32xf32>
    %c0_4 = arith.constant 0 : index
    %c0_5 = arith.constant 0 : index
    %11 = vector.load %arg5[%c0_4, %c0_5] : memref<1x32xf32, #tpu.memory_space<vmem>>, vector<1x32xf32>
    %12 = vector.broadcast %11 : vector<1x32xf32> to vector<8x32xf32>
    %13 = arith.addf %10, %12 : vector<8x32xf32>
    %cst_6 = arith.constant 0.353553385 : f32
    %14 = vector.broadcast %cst_6 : f32 to vector<8x32xf32>
    %15 = arith.mulf %13, %14 : vector<8x32xf32>
    %16 = arith.truncf %15 : vector<8x32xf32> to vector<8x32xbf16>
    %c0_7 = arith.constant 0 : index
    %c0_8 = arith.constant 0 : index
    %c0_9 = arith.constant 0 : index
    %17 = vector.load %arg3[%c0_7, %c0_8, %c0_9] : memref<1x8x8xi8, #tpu.memory_space<vmem>>, vector<1x8x8xi8>
    %18 = vector.shape_cast %17 : vector<1x8x8xi8> to vector<8x8xi8>
    %c0_i8 = arith.constant 0 : i8
    %19 = vector.broadcast %c0_i8 : i8 to vector<8x8xi8>
    %20 = arith.cmpi ne, %18, %19 : vector<8x8xi8>
    %21 = vector.extract_strided_slice %16 {offsets = [0, 0], sizes = [8, 8], strides = [1, 1]} : vector<8x32xbf16> to vector<8x8xbf16>
    %c0_10 = arith.constant 0 : index
    %c0_11 = arith.constant 0 : index
    %22 = vector.load %arg15[%c0_10, %c0_11] : memref<8x32xbf16, #tpu.memory_space<vmem>>, vector<8x8xbf16>
    %c0_12 = arith.constant 0 : index
    %c0_13 = arith.constant 0 : index
    %23 = vector.load %arg16[%c0_12, %c0_13] : memref<8x32xbf16, #tpu.memory_space<vmem>>, vector<8x8xbf16>
    %cst_14 = arith.constant dense<0.000000e+00> : vector<8x8xf32>
    %24 = tpu.matmul %21, %22, %cst_14 {dimension_numbers = #tpu.dot_dimension_numbers<[1], [1], [0], [0], [0, 0, 1, 0], [], []>} : vector<8x8xbf16>, vector<8x8xbf16>, vector<8x8xf32> -> vector<8x8xf32>
    %cst_15 = arith.constant 1.000000e+04 : f32
    %25 = vector.broadcast %cst_15 : f32 to vector<8x8xf32>
    %26 = arith.subf %24, %25 : vector<8x8xf32>
    %27 = arith.select %20, %24, %26 : vector<8x8xi1>, vector<8x8xf32>
    %cst_16 = arith.constant dense<0xFF800000> : vector<8xf32>
    %28 = vector.multi_reduction <maximumf>, %27, %cst_16 [1] : vector<8x8xf32> to vector<8xf32>
    %29 = vector.shape_cast %28 : vector<8xf32> to vector<8x1xf32>
    %30 = vector.broadcast %29 : vector<8x1xf32> to vector<8x8xf32>
    %31 = arith.subf %27, %30 : vector<8x8xf32>
    %32 = math.exp %31 : vector<8x8xf32>
    %cst_17 = arith.constant dense<0.000000e+00> : vector<8xf32>
    %33 = vector.multi_reduction <add>, %32, %cst_17 [1] : vector<8x8xf32> to vector<8xf32>
    %34 = vector.shape_cast %33 : vector<8xf32> to vector<8x1xf32>
    %35 = tpu.reciprocal %34 {approx = true} : vector<8x1xf32> -> vector<8x1xf32>
    %36 = vector.broadcast %35 : vector<8x1xf32> to vector<8x8xf32>
    %37 = arith.mulf %32, %36 : vector<8x8xf32>
    %38 = arith.truncf %37 : vector<8x8xf32> to vector<8x8xbf16>
    %cst_18 = arith.constant dense<0.000000e+00> : vector<8x8xf32>
    %39 = tpu.matmul %38, %23, %cst_18 {dimension_numbers = #tpu.dot_dimension_numbers<[1], [0], [0], [1], [0, 0, 1, 1], [], []>} : vector<8x8xbf16>, vector<8x8xbf16>, vector<8x8xf32> -> vector<8x8xf32>
    %40 = arith.truncf %39 : vector<8x8xf32> to vector<8x8xbf16>
    %c0_19 = arith.constant 0 : index
    %c0_20 = arith.constant 0 : index
    %41 = vector.load %arg17[%c0_19, %c0_20] : memref<8x32xbf16, #tpu.memory_space<vmem>>, vector<8x8xbf16>
    tpu.vector_store %arg17[%c0_19, %c0_20], %40 {strides = array<i32>} : memref<8x32xbf16, #tpu.memory_space<vmem>>, vector<8x8xbf16>,
    %42 = vector.extract_strided_slice %16 {offsets = [0, 8], sizes = [8, 8], strides = [1, 1]} : vector<8x32xbf16> to vector<8x8xbf16>
    %c0_21 = arith.constant 0 : index
    %c8 = arith.constant 8 : index
    %43 = vector.load %arg15[%c0_21, %c8] : memref<8x32xbf16, #tpu.memory_space<vmem>>, vector<8x8xbf16>
    %c0_22 = arith.constant 0 : index
    %c8_23 = arith.constant 8 : index
    %44 = vector.load %arg16[%c0_22, %c8_23] : memref<8x32xbf16, #tpu.memory_space<vmem>>, vector<8x8xbf16>
    %cst_24 = arith.constant dense<0.000000e+00> : vector<8x8xf32>
    %45 = tpu.matmul %42, %43, %cst_24 {dimension_numbers = #tpu.dot_dimension_numbers<[1], [1], [0], [0], [0, 0, 1, 0], [], []>} : vector<8x8xbf16>, vector<8x8xbf16>, vector<8x8xf32> -> vector<8x8xf32>
    %cst_25 = arith.constant 1.000000e+04 : f32
    %46 = vector.broadcast %cst_25 : f32 to vector<8x8xf32>
    %47 = arith.subf %45, %46 : vector<8x8xf32>
    %48 = arith.select %20, %45, %47 : vector<8x8xi1>, vector<8x8xf32>
    %cst_26 = arith.constant dense<0xFF800000> : vector<8xf32>
    %49 = vector.multi_reduction <maximumf>, %48, %cst_26 [1] : vector<8x8xf32> to vector<8xf32>
    %50 = vector.shape_cast %49 : vector<8xf32> to vector<8x1xf32>
    %51 = vector.broadcast %50 : vector<8x1xf32> to vector<8x8xf32>
    %52 = arith.subf %48, %51 : vector<8x8xf32>
    %53 = math.exp %52 : vector<8x8xf32>
    %cst_27 = arith.constant dense<0.000000e+00> : vector<8xf32>
    %54 = vector.multi_reduction <add>, %53, %cst_27 [1] : vector<8x8xf32> to vector<8xf32>
    %55 = vector.shape_cast %54 : vector<8xf32> to vector<8x1xf32>
    %56 = tpu.reciprocal %55 {approx = true} : vector<8x1xf32> -> vector<8x1xf32>
    %57 = vector.broadcast %56 : vector<8x1xf32> to vector<8x8xf32>
    %58 = arith.mulf %53, %57 : vector<8x8xf32>
    %59 = arith.truncf %58 : vector<8x8xf32> to vector<8x8xbf16>
    %cst_28 = arith.constant dense<0.000000e+00> : vector<8x8xf32>
    %60 = tpu.matmul %59, %44, %cst_28 {dimension_numbers = #tpu.dot_dimension_numbers<[1], [0], [0], [1], [0, 0, 1, 1], [], []>} : vector<8x8xbf16>, vector<8x8xbf16>, vector<8x8xf32> -> vector<8x8xf32>
    %61 = arith.truncf %60 : vector<8x8xf32> to vector<8x8xbf16>
    %c0_29 = arith.constant 0 : index
    %c8_30 = arith.constant 8 : index
    %62 = vector.load %arg17[%c0_29, %c8_30] : memref<8x32xbf16, #tpu.memory_space<vmem>>, vector<8x8xbf16>
    tpu.vector_store %arg17[%c0_29, %c8_30], %61 {strides = array<i32>} : memref<8x32xbf16, #tpu.memory_space<vmem>>, vector<8x8xbf16>,
    %63 = vector.extract_strided_slice %16 {offsets = [0, 16], sizes = [8, 8], strides = [1, 1]} : vector<8x32xbf16> to vector<8x8xbf16>
    %c0_31 = arith.constant 0 : index
    %c16 = arith.constant 16 : index
    %64 = vector.load %arg15[%c0_31, %c16] : memref<8x32xbf16, #tpu.memory_space<vmem>>, vector<8x8xbf16>
    %c0_32 = arith.constant 0 : index
    %c16_33 = arith.constant 16 : index
    %65 = vector.load %arg16[%c0_32, %c16_33] : memref<8x32xbf16, #tpu.memory_space<vmem>>, vector<8x8xbf16>
    %cst_34 = arith.constant dense<0.000000e+00> : vector<8x8xf32>
    %66 = tpu.matmul %63, %64, %cst_34 {dimension_numbers = #tpu.dot_dimension_numbers<[1], [1], [0], [0], [0, 0, 1, 0], [], []>} : vector<8x8xbf16>, vector<8x8xbf16>, vector<8x8xf32> -> vector<8x8xf32>
    %cst_35 = arith.constant 1.000000e+04 : f32
    %67 = vector.broadcast %cst_35 : f32 to vector<8x8xf32>
    %68 = arith.subf %66, %67 : vector<8x8xf32>
    %69 = arith.select %20, %66, %68 : vector<8x8xi1>, vector<8x8xf32>
    %cst_36 = arith.constant dense<0xFF800000> : vector<8xf32>
    %70 = vector.multi_reduction <maximumf>, %69, %cst_36 [1] : vector<8x8xf32> to vector<8xf32>
    %71 = vector.shape_cast %70 : vector<8xf32> to vector<8x1xf32>
    %72 = vector.broadcast %71 : vector<8x1xf32> to vector<8x8xf32>
    %73 = arith.subf %69, %72 : vector<8x8xf32>
    %74 = math.exp %73 : vector<8x8xf32>
    %cst_37 = arith.constant dense<0.000000e+00> : vector<8xf32>
    %75 = vector.multi_reduction <add>, %74, %cst_37 [1] : vector<8x8xf32> to vector<8xf32>
    %76 = vector.shape_cast %75 : vector<8xf32> to vector<8x1xf32>
    %77 = tpu.reciprocal %76 {approx = true} : vector<8x1xf32> -> vector<8x1xf32>
    %78 = vector.broadcast %77 : vector<8x1xf32> to vector<8x8xf32>
    %79 = arith.mulf %74, %78 : vector<8x8xf32>
    %80 = arith.truncf %79 : vector<8x8xf32> to vector<8x8xbf16>
    %cst_38 = arith.constant dense<0.000000e+00> : vector<8x8xf32>
    %81 = tpu.matmul %80, %65, %cst_38 {dimension_numbers = #tpu.dot_dimension_numbers<[1], [0], [0], [1], [0, 0, 1, 1], [], []>} : vector<8x8xbf16>, vector<8x8xbf16>, vector<8x8xf32> -> vector<8x8xf32>
    %82 = arith.truncf %81 : vector<8x8xf32> to vector<8x8xbf16>
    %c0_39 = arith.constant 0 : index
    %c16_40 = arith.constant 16 : index
    %83 = vector.load %arg17[%c0_39, %c16_40] : memref<8x32xbf16, #tpu.memory_space<vmem>>, vector<8x8xbf16>
    tpu.vector_store %arg17[%c0_39, %c16_40], %82 {strides = array<i32>} : memref<8x32xbf16, #tpu.memory_space<vmem>>, vector<8x8xbf16>,
    %84 = vector.extract_strided_slice %16 {offsets = [0, 24], sizes = [8, 8], strides = [1, 1]} : vector<8x32xbf16> to vector<8x8xbf16>
    %c0_41 = arith.constant 0 : index
    %c24 = arith.constant 24 : index
    %85 = vector.load %arg15[%c0_41, %c24] : memref<8x32xbf16, #tpu.memory_space<vmem>>, vector<8x8xbf16>
    %c0_42 = arith.constant 0 : index
    %c24_43 = arith.constant 24 : index
    %86 = vector.load %arg16[%c0_42, %c24_43] : memref<8x32xbf16, #tpu.memory_space<vmem>>, vector<8x8xbf16>
    %cst_44 = arith.constant dense<0.000000e+00> : vector<8x8xf32>
    %87 = tpu.matmul %84, %85, %cst_44 {dimension_numbers = #tpu.dot_dimension_numbers<[1], [1], [0], [0], [0, 0, 1, 0], [], []>} : vector<8x8xbf16>, vector<8x8xbf16>, vector<8x8xf32> -> vector<8x8xf32>
    %cst_45 = arith.constant 1.000000e+04 : f32
    %88 = vector.broadcast %cst_45 : f32 to vector<8x8xf32>
    %89 = arith.subf %87, %88 : vector<8x8xf32>
    %90 = arith.select %20, %87, %89 : vector<8x8xi1>, vector<8x8xf32>
    %cst_46 = arith.constant dense<0xFF800000> : vector<8xf32>
    %91 = vector.multi_reduction <maximumf>, %90, %cst_46 [1] : vector<8x8xf32> to vector<8xf32>
    %92 = vector.shape_cast %91 : vector<8xf32> to vector<8x1xf32>
    %93 = vector.broadcast %92 : vector<8x1xf32> to vector<8x8xf32>
    %94 = arith.subf %90, %93 : vector<8x8xf32>
    %95 = math.exp %94 : vector<8x8xf32>
    %cst_47 = arith.constant dense<0.000000e+00> : vector<8xf32>
    %96 = vector.multi_reduction <add>, %95, %cst_47 [1] : vector<8x8xf32> to vector<8xf32>
    %97 = vector.shape_cast %96 : vector<8xf32> to vector<8x1xf32>
    %98 = tpu.reciprocal %97 {approx = true} : vector<8x1xf32> -> vector<8x1xf32>
    %99 = vector.broadcast %98 : vector<8x1xf32> to vector<8x8xf32>
    %100 = arith.mulf %95, %99 : vector<8x8xf32>
    %101 = arith.truncf %100 : vector<8x8xf32> to vector<8x8xbf16>
    %cst_48 = arith.constant dense<0.000000e+00> : vector<8x8xf32>
    %102 = tpu.matmul %101, %86, %cst_48 {dimension_numbers = #tpu.dot_dimension_numbers<[1], [0], [0], [1], [0, 0, 1, 1], [], []>} : vector<8x8xbf16>, vector<8x8xbf16>, vector<8x8xf32> -> vector<8x8xf32>
    %103 = arith.truncf %102 : vector<8x8xf32> to vector<8x8xbf16>
    %c0_49 = arith.constant 0 : index
    %c24_50 = arith.constant 24 : index
    %104 = vector.load %arg17[%c0_49, %c24_50] : memref<8x32xbf16, #tpu.memory_space<vmem>>, vector<8x8xbf16>
    tpu.vector_store %arg17[%c0_49, %c24_50], %103 {strides = array<i32>} : memref<8x32xbf16, #tpu.memory_space<vmem>>, vector<8x8xbf16>,
    %c0_51 = arith.constant 0 : index
    %c0_52 = arith.constant 0 : index
    %105 = vector.load %arg17[%c0_51, %c0_52] : memref<8x32xbf16, #tpu.memory_space<vmem>>, vector<8x32xbf16>
    %c0_53 = arith.constant 0 : index
    %c0_54 = arith.constant 0 : index
    %106 = vector.load %arg10[%c0_53, %c0_54] : memref<32x32xbf16, #tpu.memory_space<vmem>>, vector<32x32xbf16>
    %cst_55 = arith.constant dense<0.000000e+00> : vector<8x32xf32>
    %107 = tpu.matmul %105, %106, %cst_55 {dimension_numbers = #tpu.dot_dimension_numbers<[1], [0], [0], [1], [0, 0, 1, 1], [], []>} : vector<8x32xbf16>, vector<32x32xbf16>, vector<8x32xf32> -> vector<8x32xf32>
    %c0_56 = arith.constant 0 : index
    %c0_57 = arith.constant 0 : index
    %108 = vector.load %arg11[%c0_56, %c0_57] : memref<1x32xf32, #tpu.memory_space<vmem>>, vector<1x32xf32>
    %109 = vector.broadcast %108 : vector<1x32xf32> to vector<8x32xf32>
    %110 = arith.addf %107, %109 : vector<8x32xf32>
    %111 = arith.addf %110, %7 : vector<8x32xf32>
    %cst_58 = arith.constant dense<0.000000e+00> : vector<8xf32>
    %112 = vector.multi_reduction <add>, %111, %cst_58 [1] : vector<8x32xf32> to vector<8xf32>
    %113 = vector.shape_cast %112 : vector<8xf32> to vector<8x1xf32>
    %cst_59 = arith.constant 3.200000e+01 : f32
    %114 = vector.broadcast %cst_59 : f32 to vector<8x1xf32>
    %115 = arith.divf %113, %114 : vector<8x1xf32>
    %116 = vector.broadcast %115 : vector<8x1xf32> to vector<8x32xf32>
    %117 = arith.subf %111, %116 : vector<8x32xf32>
    %118 = arith.mulf %117, %117 : vector<8x32xf32>
    %cst_60 = arith.constant dense<0.000000e+00> : vector<8xf32>
    %119 = vector.multi_reduction <add>, %118, %cst_60 [1] : vector<8x32xf32> to vector<8xf32>
    %120 = vector.shape_cast %119 : vector<8xf32> to vector<8x1xf32>
    %cst_61 = arith.constant 3.200000e+01 : f32
    %121 = vector.broadcast %cst_61 : f32 to vector<8x1xf32>
    %122 = arith.divf %120, %121 : vector<8x1xf32>
    %123 = vector.broadcast %115 : vector<8x1xf32> to vector<8x32xf32>
    %124 = arith.subf %111, %123 : vector<8x32xf32>
    %cst_62 = arith.constant 9.99999996E-13 : f32
    %125 = vector.broadcast %cst_62 : f32 to vector<8x1xf32>
    %126 = arith.addf %122, %125 : vector<8x1xf32>
    %127 = math.rsqrt %126 : vector<8x1xf32>
    %128 = vector.broadcast %127 : vector<8x1xf32> to vector<8x32xf32>
    %129 = arith.mulf %124, %128 : vector<8x32xf32>
    %c0_63 = arith.constant 0 : index
    %c0_64 = arith.constant 0 : index
    %130 = vector.load %arg12[%c0_63, %c0_64] : memref<1x32xf32, #tpu.memory_space<vmem>>, vector<1x32xf32>
    %131 = vector.broadcast %130 : vector<1x32xf32> to vector<8x32xf32>
    %132 = arith.mulf %131, %129 : vector<8x32xf32>
    %c0_65 = arith.constant 0 : index
    %c0_66 = arith.constant 0 : index
    %133 = vector.load %arg13[%c0_65, %c0_66] : memref<1x32xf32, #tpu.memory_space<vmem>>, vector<1x32xf32>
    %134 = vector.broadcast %133 : vector<1x32xf32> to vector<8x32xf32>
    %135 = arith.addf %132, %134 : vector<8x32xf32>
    %c0_67 = arith.constant 0 : index
    %c0_68 = arith.constant 0 : index
    %c0_69 = arith.constant 0 : index
    %136 = vector.load %arg14[%c0_67, %c0_68, %c0_69] : memref<1x8x32xf32, #tpu.memory_space<vmem>>, vector<1x8x32xf32>
    %137 = vector.shape_cast %136 : vector<1x8x32xf32> to vector<8x32xf32>
    %138 = vector.shape_cast %135 : vector<8x32xf32> to vector<1x8x32xf32>
    tpu.vector_store %arg14[%c0_67, %c0_68, %c0_69], %138 {strides = array<i32>} : memref<1x8x32xf32, #tpu.memory_space<vmem>>, vector<1x8x32xf32>,
    return
  }
  func.func @transform_0(%arg0: i32, %arg1: i32) -> (i32, i32, i32) {
    %c0_i32 = arith.constant 0 : i32
    %c0_i32_0 = arith.constant 0 : i32
    %c0_i32_1 = arith.constant 0 : i32
    return %arg0, %c0_i32, %c0_i32_0 : i32, i32, i32
  }
  func.func @transform_1(%arg0: i32, %arg1: i32) -> (i32, i32, i32) {
    %c0_i32 = arith.constant 0 : i32
    %c0_i32_0 = arith.constant 0 : i32
    return %arg0, %arg1, %c0_i32 : i32, i32, i32
  }
  func.func @transform_2(%arg0: i32, %arg1: i32) -> (i32, i32) {
    %c0_i32 = arith.constant 0 : i32
    %c0_i32_0 = arith.constant 0 : i32
    %c0_i32_1 = arith.constant 0 : i32
    return %c0_i32, %c0_i32_0 : i32, i32
  }
  func.func @transform_3(%arg0: i32, %arg1: i32) -> (i32, i32) {
    %c0_i32 = arith.constant 0 : i32
    %c0_i32_0 = arith.constant 0 : i32
    %c0_i32_1 = arith.constant 0 : i32
    return %c0_i32, %c0_i32_0 : i32, i32
  }
  func.func @transform_4(%arg0: i32, %arg1: i32) -> (i32, i32) {
    %c0_i32 = arith.constant 0 : i32
    %c0_i32_0 = arith.constant 0 : i32
    %c0_i32_1 = arith.constant 0 : i32
    return %c0_i32, %c0_i32_0 : i32, i32
  }
  func.func @transform_5(%arg0: i32, %arg1: i32) -> (i32, i32) {
    %c0_i32 = arith.constant 0 : i32
    %c0_i32_0 = arith.constant 0 : i32
    %c0_i32_1 = arith.constant 0 : i32
    return %c0_i32, %c0_i32_0 : i32, i32
  }
  func.func @transform_6(%arg0: i32, %arg1: i32) -> (i32, i32) {
    %c0_i32 = arith.constant 0 : i32
    %c0_i32_0 = arith.constant 0 : i32
    %c0_i32_1 = arith.constant 0 : i32
    return %c0_i32, %c0_i32_0 : i32, i32
  }
  func.func @transform_7(%arg0: i32, %arg1: i32) -> (i32, i32) {
    %c0_i32 = arith.constant 0 : i32
    %c0_i32_0 = arith.constant 0 : i32
    %c0_i32_1 = arith.constant 0 : i32
    return %c0_i32, %c0_i32_0 : i32, i32
  }
  func.func @transform_8(%arg0: i32, %arg1: i32) -> (i32, i32) {
    %c0_i32 = arith.constant 0 : i32
    %c0_i32_0 = arith.constant 0 : i32
    %c0_i32_1 = arith.constant 0 : i32
    return %c0_i32, %c0_i32_0 : i32, i32
  }
  func.func @transform_9(%arg0: i32, %arg1: i32) -> (i32, i32) {
    %c0_i32 = arith.constant 0 : i32
    %c0_i32_0 = arith.constant 0 : i32
    %c0_i32_1 = arith.constant 0 : i32
    return %c0_i32, %c0_i32_0 : i32, i32
  }
  func.func @transform_10(%arg0: i32, %arg1: i32) -> (i32, i32) {
    %c0_i32 = arith.constant 0 : i32
    %c0_i32_0 = arith.constant 0 : i32
    %c0_i32_1 = arith.constant 0 : i32
    return %c0_i32, %c0_i32_0 : i32, i32
  }
  func.func @transform_11(%arg0: i32, %arg1: i32) -> (i32, i32) {
    %c0_i32 = arith.constant 0 : i32
    %c0_i32_0 = arith.constant 0 : i32
    %c0_i32_1 = arith.constant 0 : i32
    return %c0_i32, %c0_i32_0 : i32, i32
  }
  func.func @transform_12(%arg0: i32, %arg1: i32) -> (i32, i32, i32) {
    %c0_i32 = arith.constant 0 : i32
    %c0_i32_0 = arith.constant 0 : i32
    return %arg0, %arg1, %c0_i32 : i32, i32, i32
  }
}

</mosaic_0001>

<bundles_post_ra>
// kernel: tpu_custom_call.1
= control target key start
LH: loop header
LB: loop body
LE: loop exit
PB: predicated region body
PF: predicated region fallthrough
CT: control target
= control target key end

     0   :  { %s2582_s0 = inlined_call_operand.hbm [shape: f32[2,8,32], index: 0, kind: input, shape index: {}]   ;;  %s2583_s1 = inlined_call_operand.hbm [shape: s8[2,8,8], index: 1, kind: input, shape index: {}]   ;;  %s2584_s2 = inlined_call_operand.hbm [shape: bf16[32,32], index: 2, kind: input, shape index: {}]   ;;  %s2585_s3 = inlined_call_operand.vmem [shape: f32[1,32], index: 3, kind: input, shape index: {}]   ;;  %s2586_s4 = inlined_call_operand.hbm [shape: bf16[32,32], index: 4, kind: input, shape index: {}]   ;;  %s2587_s5 = inlined_call_operand.vmem [shape: f32[1,32], index: 5, kind: input, shape index: {}]   ;;  %s2588_s6 = inlined_call_operand.vmem [shape: bf16[32,32], index: 6, kind: input, shape index: {}]   ;;  %s2589_s7 = inlined_call_operand.vmem [shape: f32[1,32], index: 7, kind: input, shape index: {}]   ;;  %s2590_s8 = inlined_call_operand.hbm [shape: bf16[32,32], index: 8, kind: input, shape index: {}]   ;;  %s2591_s9 = inlined_call_operand.vmem [shape: f32[1,32], index: 9, kind: input, shape index: {}]   ;;  %s2592_s10 = inlined_call_operand.vmem [shape: f32[1,32], index: 10, kind: input, shape index: {}]   ;;  %s2593_s11 = inlined_call_operand.vmem [shape: f32[1,32], index: 11, kind: input, shape index: {}]   ;;  %s2594_s12 = inlined_call_operand.hbm [shape: f32[2,8,32], index: 12, kind: output, shape index: {}]  }
   0x1   :  { %2602 = sst [smem:[#allocation23_spill]] %s2582_s0 }
   0x2   :  { %2603 = sst [smem:[#allocation24_spill]] %s2584_s2 }
   0x3   :  { %2604 = sst [smem:[#allocation25_spill]] %s2589_s7 }
   0x4   :  { %2605 = sst [smem:[#allocation26_spill]] %s2591_s9 }
   0x5   :  { %2606 = sst [smem:[#allocation27_spill]] %s2592_s10 }
   0x6   :  { %2607 = sst [smem:[#allocation28_spill]] %s2593_s11 }
   0x7   :  { %2608 = sst [smem:[#allocation29_spill]] %s2594_s12 }
   0x8   :  { %17 = vsyncpa [#allocation6], 0 }
   0x9   :  { %19 = vsyncpa [#allocation6 + $0x1], 0 }
   0xa   :  { %20 = vsyncpa [#allocation9], 0 }
   0xb   :  { %22 = vsyncpa [#allocation9 + $0x1], 0 }
   0xc   :  { %23 = vsyncpa [#allocation12], 0 }
   0xd   :  { %24 = vsyncpa [#allocation7], 0 }
   0xe   :  { %26 = vsyncpa [#allocation7 + $0x1], 0  ;;  %s2131_s21 = smov 0   ;;  %s2133_s22 = smov 0  }
   0xf   :  { %s2135_s23 = smov 0   ;;  %s2137_s24 = smov 0  }
  0x10   :  { %s2139_s25 = smov 0   ;;  %s2141_s26 = smov 0  }
  0x11 LB: > { %2609 = sst [smem:[#allocation20_spill]] %s2027_s21  ;;  %s2162_s27 = sadd.s32 4294967295, %s2047_s26   ;;  %s2047_s26 = sphi %s2141_s26, %s32_s26   ;;  %s2043_s25 = sphi %s2139_s25, %s2646_s25   ;;  %s2039_s24 = sphi %s2137_s24, %s2645_s24   ;;  %s2035_s23 = sphi %s2135_s23, %s2644_s23   ;;  %s2031_s22 = sphi %s2133_s22, %s2643_s22   ;;  %s2027_s21 = sphi %s2131_s21, %s2642_s21  }
  0x12   : > { %2610 = sst [smem:[#allocation21_spill]] %s2039_s24  ;;  %s1497_s28 = sadd.s32 4294967294, %s2047_s26  }
  0x13   : > { %p64_p0 = scmp.ne.s32.totalorder %s2031_s22, %s2027_s21  ;;  %p2598_p1 = scmp.eq.s32.totalorder %s2162_s27, 0 }
  0x14   : > { %p334_p3 = scmp.eq.s32.totalorder %s1497_s28, 1  ;;  %p1498_p5 = scmp.ge.s32.totalorder %s2047_s26, 1 }
  0x15   : > { %p2171_p4 = por %p2598_p1, %p64_p0  ;;  %p341_p7 = scmp.lt.s32.totalorder %s2047_s26, 3 }
  0x16   : > { %p2176_p6 = por %p334_p3, %p64_p0  ;;  %s2049_s14 = smov [#allocation10]  }
  0x17   : > { %s2611_s29 = scalar_select %p2171_p4, 1, 0 }
  0x18   : > { %s2612_s30 = scalar_select %p2176_p6, 1, 0 }
  0x19   : > { %p2181_p8 = pnand %p1498_p5, %p341_p7  ;;  %s353_s15 = sshll.u32 %s2049_s14, 4  ;;  %s2185_s15 = int_to_ptr.vmem [resolvable:$true] %s353_s15 }
  0x1a   : > { %2613 = sst [smem:[#allocation22_spill]] %s2612_s30  ;;  %s2050_s17 = smov [#allocation11]  }
  0x1b   : > { %s2614_s13 = scalar_select %p2181_p8, 1, 0 }
  0x1c   : > { %p1686_p9 = pneg %p2181_p8  ;;  %s369_s18 = sshll.u32 %s2050_s17, 4  ;;  %s2196_s18 = int_to_ptr.vmem [resolvable:$true] %s369_s18 }
  0x1d   : > { %s2051_s19 = smov [#allocation13]   ;;  %s2616_s2 = sld [smem:[#allocation24_spill]] }
  0x1e   : > { %p2192_p11 = pnand %p1686_p9, %p2598_p1  ;;  %s2198_s20 = sshll.u32 %s2051_s19, 4  ;;  %s392_s20 = int_to_ptr.vmem [resolvable:$true] %s2198_s20 }
  0x20   : > { %p2208_p13 = pneg %p2192_p11 }
  0x23   : > { %s1809_s30 = scalar_lea.hbm %s2616_s2, 256 }
  0x24   : > { %p1810_p12 = scmp.ne.s32.totalorder %s2616_s2, %s1809_s30  ;;  %p1816_p5 = scmp.lt.u32.totalorder %s1809_s30, %s2616_s2 }
  0x26   : > { %p1812_p0 = pnand %p2208_p13, %p1810_p12 }
  0x28   : > { %p1813_p3 = pneg %p1812_p0 }
  0x2a   : > { %p1818_p7 = pnand %p1816_p5, %p1813_p3 }
  0x2c   : > { %1821 = shalt.err (!%p1818_p7)
}
  0x2d   : > { %s1822_s12 = scalar_lea.vmem %s2185_s15, 256  ;;  %p1830_p2 = scmp.lt.s32.totalorder %s2185_s15, %s2185_s15 }
  0x2e   : > { %p1823_p9 = scmp.ne.s32.totalorder %s2185_s15, %s1822_s12  ;;  %p1831_p6 = scmp.lt.s32.totalorder %s1822_s12, %s1822_s12 }
  0x30   : > { %p1825_p10 = pnand %p1823_p9, %p2208_p13  ;;  %p1832_p12 = por %p1831_p6, %p1830_p2 }
  0x32   : > { %p1826_p1 = pneg %p1825_p10 }
  0x34   : > { %p1833_p0 = pnand %p1832_p12, %p1826_p1 }
  0x36   : > { %1836 = shalt.err (!%p1833_p0)
}
  0x37   : > { %s2052_s21 = smov 64   ;;  %s2053_s30 = smov 4  }
  0x38   : > { %1689 = dma.hbm_to_vmem [thread:$0]  (!%p2192_p11), %s2616_s2, 256, %s2185_s15, [#allocation9], %s2052_s21, %s2052_s21, %s2053_s30  }
  0x39   : > { %s1837_s12 = scalar_lea.hbm %s2586_s4, 256 }
  0x3a   : > { %p1838_p1 = scmp.ne.s32.totalorder %s2586_s4, %s1837_s12  ;;  %p1844_p10 = scmp.lt.u32.totalorder %s1837_s12, %s2586_s4 }
  0x3c   : > { %p1840_p2 = pnand %p1838_p1, %p2208_p13 }
  0x3e   : > { %p1841_p6 = pneg %p1840_p2 }
  0x40   : > { %p1846_p3 = pnand %p1844_p10, %p1841_p6 }
  0x42   : > { %1849 = shalt.err (!%p1846_p3)
}
  0x43   : > { %s1850_s15 = scalar_lea.vmem %s2196_s18, 256  ;;  %p1858_p12 = scmp.lt.s32.totalorder %s2196_s18, %s2196_s18 }
  0x44   : > { %p1851_p5 = scmp.ne.s32.totalorder %s2196_s18, %s1850_s15  ;;  %p1859_p0 = scmp.lt.s32.totalorder %s1850_s15, %s1850_s15 }
  0x46   : > { %p1853_p7 = pnand %p1851_p5, %p2208_p13  ;;  %p1860_p1 = por %p1859_p0, %p1858_p12 }
  0x48   : > { %p1854_p9 = pneg %p1853_p7 }
  0x4a   : > { %p1861_p2 = pnand %p1860_p1, %p1854_p9 }
  0x4c   : > { %1864 = shalt.err (!%p1861_p2)
}
  0x4d   : > { %1692 = dma.hbm_to_vmem [thread:$0]  (!%p2192_p11), %s2586_s4, 256, %s2196_s18, [#allocation12], %s2052_s21, %s2052_s21, %s2053_s30  }
  0x4e   : > { %s1865_s28 = scalar_lea.hbm %s2590_s8, 256 }
  0x4f   : > { %p1866_p6 = scmp.ne.s32.totalorder %s2590_s8, %s1865_s28  ;;  %p1872_p5 = scmp.lt.u32.totalorder %s1865_s28, %s2590_s8 }
  0x51   : > { %p1868_p10 = pnand %p1866_p6, %p2208_p13 }
  0x53   : > { %p1869_p3 = pneg %p1868_p10 }
  0x55   : > { %p1874_p7 = pnand %p1872_p5, %p1869_p3 }
  0x57   : > { %1877 = shalt.err (!%p1874_p7)
}
  0x58   : > { %s1878_s15 = scalar_lea.vmem %s392_s20, 256  ;;  %p1886_p1 = scmp.lt.s32.totalorder %s392_s20, %s392_s20 }
  0x59   : > { %p1879_p9 = scmp.ne.s32.totalorder %s392_s20, %s1878_s15  ;;  %p1887_p2 = scmp.lt.s32.totalorder %s1878_s15, %s1878_s15 }
  0x5b   : > { %p1881_p12 = pnand %p1879_p9, %p2208_p13  ;;  %p1888_p4 = por %p1887_p2, %p1886_p1 }
  0x5d   : > { %p1882_p0 = pneg %p1881_p12 }
  0x5f   : > { %p1889_p8 = pnand %p1888_p4, %p1882_p0 }
  0x61   : > { %1892 = shalt.err (!%p1889_p8)
}
  0x62   : > { %1695 = dma.hbm_to_vmem [thread:$0]  (!%p2192_p11), %s2590_s8, 256, %s392_s20, [#allocation12], %s2052_s21, %s2052_s21, %s2053_s30  }
  0x63   : > { %s51_s11 = sadd.s32 1, %s2035_s23  ;;  %s44_s16 = sadd.s32 1, %s2043_s25 }
  0x64   : > { %p58_p4 = scmp.ne.s32.totalorder %s2035_s23, %s2031_s22  ;;  %p46_p8 = scmp.ge.s32.totalorder %s44_s16, 2 }
  0x65   : > { %p59_p13 = scmp.eq.s32.totalorder %s2047_s26, 0  ;;  %p2618_p6 = scmp.eq.s32.totalorder %s2162_s27, 1 }
  0x66   : > { %p1710_p3 = scmp.lt.s32.totalorder %s2047_s26, 2  ;;  %s2648_s16 = smov (%p46_p8, %s44_s16), 0 }
  0x67   : > { %p2287_p10 = por %p2618_p6, %p58_p4  ;;  %p60_p5 = por %p59_p13, %p58_p4 }
  0x68   : > { %s2295_s10 = sand.u32 1, %s2035_s23   ;;  %s48_s20 = ssub.s32 %s2043_s25, %s2648_s16 }
  0x69   : > { %s2619_s9 = scalar_select %p2287_p10, 1, 0 }
  0x6a   : > { %p49_p11 = scmp.eq.s32.totalorder %s48_s20, 0  ;;  %s1503_s21 = sshll.u32 %s2295_s10, 3 }
  0x6b   : > { %s1504_s30 = sshll.u32 %s2043_s25, 7  ;;  %s2620_s0 = sld [smem:[#allocation23_spill]] }
  0x6c   : > { %s2302_s24 = scalar_select %p49_p11, %s2035_s23, %s51_s11  }
  0x6d   : > { %s418_s19 = scalar_lea.vmem [#allocation5], %s1503_s21  ;;  %p2313_p7 = pnand %p1710_p3, %p60_p5 }
  0x6e   : > { %s425_s12 = sshll.u32 %s418_s19, 4  ;;  %s1505_s7 = sshll.u32 %s2295_s10, 1  ;;  %s2309_s12 = int_to_ptr.vmem [resolvable:$true] %s425_s12 }
  0x6f   : > { %s415_s11 = scalar_lea.sflag [#allocation6], %s2295_s10  ;;  %p1895_p12 = pneg %p2313_p7 }
  0x71   : > { %s2307_s17 = scalar_lea.hbm %s2620_s0, %s1504_s30  ;;  %s1898_s28 = scalar_lea.hbm %s2620_s0, 256 }
  0x72   : > { %s1893_s20 = scalar_lea.hbm %s2307_s17, 128  ;;  %p1899_p2 = scmp.lt.u32.totalorder %s2307_s17, %s2620_s0 }
  0x73   : > { %p1894_p9 = scmp.ne.s32.totalorder %s2307_s17, %s1893_s20  ;;  %p1900_p4 = scmp.lt.u32.totalorder %s1898_s28, %s1893_s20 }
  0x74   : > { %p1902_p13 = scmp.lt.u32.totalorder %s1893_s20, %s2307_s17 }
  0x75   : > { %p1896_p0 = pnand %p1895_p12, %p1894_p9  ;;  %p1901_p8 = por %p1900_p4, %p1899_p2 }
  0x77   : > { %p1897_p1 = pneg %p1896_p0  ;;  %p1903_p6 = por %p1902_p13, %p1901_p8 }
  0x79   : > { %p1904_p3 = pnand %p1903_p6, %p1897_p1 }
  0x7b   : > { %1907 = shalt.err (!%p1904_p3)
}
  0x7c   : > { %s1908_s18 = scalar_lea.vmem %s2309_s12, 128  ;;  %s2054_s21 = smov [#allocation5]  }
  0x7d   : > { %p1909_p5 = scmp.ne.s32.totalorder %s2309_s12, %s1908_s18  ;;  %s1913_s30 = sshll.u32 %s2054_s21, 4  ;;  %s1914_s30 = int_to_ptr.vmem [resolvable:$false] %s1913_s30 }
  0x7e   : > { %s1915_s14 = scalar_lea.vmem %s1914_s30, 256  ;;  %p1916_p0 = scmp.lt.s32.totalorder %s2309_s12, %s1914_s30 }
  0x7f   : > { %p1911_p11 = pnand %p1909_p5, %p1895_p12  ;;  %p1917_p2 = scmp.lt.s32.totalorder %s1915_s14, %s1908_s18 }
  0x81   : > { %p1912_p9 = pneg %p1911_p11  ;;  %p1918_p4 = por %p1917_p2, %p1916_p0 }
  0x83   : > { %p1919_p8 = pnand %p1918_p4, %p1912_p9 }
  0x85   : > { %1922 = shalt.err (!%p1919_p8)
}
  0x86   : > { %1699 = dma.hbm_to_vmem [thread:$0]  (!%p2313_p7), %s2307_s17, 128, %s2309_s12, %s415_s11  }
  0x87   : > { %s1506_s20 = sshll.u32 %s2043_s25, 5  ;;  %s436_s18 = scalar_lea.vmem [#allocation8], %s1505_s7 }
  0x88   : > { %s2349_s21 = scalar_lea.hbm %s2583_s1, %s1506_s20  ;;  %s444_s30 = sshll.u32 %s436_s18, 4  ;;  %s445_s30 = int_to_ptr.vmem [resolvable:$true] %s444_s30 }
  0x89   : > { %s2622_s14 = sand.u32 1, %s2047_s26   ;;  %s1923_s2 = scalar_lea.hbm %s2349_s21, 32 }
  0x8a   : > { %s433_s0 = scalar_lea.sflag [#allocation9], %s2622_s14  ;;  %p1924_p1 = scmp.ne.s32.totalorder %s2349_s21, %s1923_s2 }
  0x8b   : > { %s1928_s11 = scalar_lea.hbm %s2583_s1, 64  ;;  %p1929_p3 = scmp.lt.u32.totalorder %s2349_s21, %s2583_s1 }
  0x8c   : > { %p1926_p13 = pnand %p1924_p1, %p1895_p12  ;;  %p1930_p5 = scmp.lt.u32.totalorder %s1928_s11, %s1923_s2 }
  0x8d   : > { %p1932_p9 = scmp.lt.u32.totalorder %s1923_s2, %s2349_s21 }
  0x8e   : > { %p1927_p6 = pneg %p1926_p13  ;;  %p1931_p11 = por %p1930_p5, %p1929_p3 }
  0x90   : > { %p1933_p0 = por %p1932_p9, %p1931_p11 }
  0x92   : > { %p1934_p2 = pnand %p1933_p0, %p1927_p6 }
  0x94   : > { %1937 = shalt.err (!%p1934_p2)
}
  0x95   : > { %s1938_s7 = scalar_lea.vmem %s445_s30, 32  ;;  %s2055_s28 = smov [#allocation8]  }
  0x96   : > { %p1939_p4 = scmp.ne.s32.totalorder %s445_s30, %s1938_s7  ;;  %s1943_s19 = sshll.u32 %s2055_s28, 4  ;;  %s1944_s19 = int_to_ptr.vmem [resolvable:$false] %s1943_s19 }
  0x97   : > { %s1945_s18 = scalar_lea.vmem %s1944_s19, 64  ;;  %p1946_p13 = scmp.lt.s32.totalorder %s445_s30, %s1944_s19 }
  0x98   : > { %p1941_p8 = pnand %p1939_p4, %p1895_p12  ;;  %p1947_p10 = scmp.lt.s32.totalorder %s1945_s18, %s1938_s7 }
  0x9a   : > { %p1942_p1 = pneg %p1941_p8  ;;  %p1948_p3 = por %p1947_p10, %p1946_p13 }
  0x9c   : > { %p1949_p5 = pnand %p1948_p3, %p1942_p1 }
  0x9e   : > { %1952 = shalt.err (!%p1949_p5)
}
  0x9f   : > { %1702 = dma.hbm_to_vmem [thread:$0]  (!%p2313_p7), %s2349_s21, 32, %s445_s30, %s433_s0  }
  0xa0   : > { %p2623_p6 = scmp.ne.s32.totalorder %s2614_s13, 0 }
  0xa1   : > { %s2377_s2 = sand.u32 (!%p2623_p6), 1, %s2031_s22   ;;  %p2624_p10 = scmp.ne.s32.totalorder (!%p2623_p6), %s2611_s29, 0 }
  0xa2   : > { %453 = sbr.rel (%p2623_p6) target bundleno = 1966 (0x7ae), region = 68  ;;  %s1508_s14 = sshll.u32 (!%p2623_p6), %s2377_s2, 3 }
  0xa3   : > { %s456_s17 = scalar_lea.sflag (!%p2623_p6), [#allocation6], %s2377_s2  ;;  %s459_s12 = scalar_lea.vmem (!%p2623_p6), [#allocation5], %s1508_s14 }
  0xa9   : > { %2006 = dma.done.wait (%p2624_p10), %s456_s17, 128  }
  0xaa   : > { %2008 = vsyncadd (%p2624_p10), %s456_s17, 4294967168  ;;  %s464_s0 = sand.u32 1, %s2162_s27   ;;  %s1509_s13 = sshll.u32 %s2377_s2, 1 }
  0xab   : > { %s465_s15 = scalar_lea.sflag [#allocation9], %s464_s0  ;;  %s2389_s21 = scalar_lea.vmem [#allocation8], %s1509_s13 }
  0xac   : > { %2010 = dma.done.wait (%p2624_p10), %s465_s15, 32  }
  0xad   : > { %2012 = vsyncadd (%p2624_p10), %s465_s15, 4294967264  ;;  %p2625_p7 = scmp.eq.s32.totalorder %s2162_s27, 0 }
  0xaf   : > { %2014 = dma.done.wait (%p2625_p7), [#allocation9], 256   ;;  %p2626_p12 = pmov %p2625_p7 }
  0xb0   : > { %p2627_p11 = pmov %p2625_p7 }
  0xb1   : > { %2016 = vsyncadd (%p2626_p12), [#allocation9], 4294967040 }
  0xb2   : > { %2018 = dma.done.wait (%p2627_p11), [#allocation12], 512   ;;  %p2628_p9 = pmov %p2625_p7 }
  0xb3   : > { %v2056_v0 = vmov 0.0   ;;  %vm2057_vm0 = vmmov 0   ;;  %v1777_v1 = vld [vmem:[#allocation11] sm:$0xff]   ;;  %v1778_v2 = vld [vmem:[#allocation11 + $0x8] sm:$0xff]   ;;  %vm559_vm1 = vcmask 261120   ;;  %v1779_v4 = vld [vmem:[#allocation10] sm:$0xff]  }
  0xb4   : > { %2020 = vsyncadd (%p2628_p9), [#allocation12], 4294966784  ;;  %1588 = vmatprep.subr.bf16.mxu0 %v2056_v0  ;;  %1592 = vmatprep.mubr.msk.bf16.mxu0 %vm2057_vm0, %v2056_v0  ;;  %v2409_v3 = vld [vmem:[%s459_s12] sm:$0xff]  ;;  %v1781_v7 = vld [vmem:[%s2588_s6] sm:$0xff]   ;;  %vm667_vm2 = vcmask 257024   ;;  %vm747_vm3 = vcmask 64512  }
  0xb5   : > { %1596 = vmatprep.subr.bf16.mxu1 %v2056_v0  ;;  %1600 = vmatprep.mubr.msk.bf16.mxu1 %vm2057_vm0, %v2056_v0  ;;  %v535_v5 = vpack.c.bf16 %v2409_v3, %v2409_v3  ;;  %v1780_v6 = vld [vmem:[#allocation10 + $0x8] sm:$0xff]   ;;  %v1514_v9 = vld [vmem:[%s2587_s5] ss:$0 sm:$0xff]  ;;  %s2058_s19 = smov 112   ;;  %s2059_s18 = smov 120   ;;  %vm814_vm4 = vcmask 1043456  }
  0xb6   : > { %1589 = vmatpush3.bf16.msra.mxu0 %v1777_v1  ;;  %1597 = vmatpush3.bf16.msra.mxu1 %v1781_v7  ;;  %v1782_v8 = vld [vmem:[%s2588_s6 + $0x8] sm:$0xff]   ;;  %v1522_v16 = vld [vmem:[%s2585_s3] ss:$0 sm:$0xff]  ;;  %s2060_s17 = smov 104   ;;  %s2629_s13 = sld [smem:[#allocation25_spill]]  ;;  %v2061_v48 = vmov 0  }
  0xb7   : > { %1590 = vmatprep.subr.bf16.mxu0 %v2056_v0  ;;  %1598 = vmatprep.subr.bf16.mxu1 %v2056_v0  ;;  %v743_v47 = vld [vmem:[%s2389_s21] sm:$0x3]  ;;  %vm859_vm7 = vcmask 60416   ;;  %s2062_s15 = smov 8   ;;  %s2063_s21 = smov 16   ;;  %vm989_vm8 = vcmask 126016  }
  0xb8   : > { %vm744_vm5 = vnez %v743_v47  ;;  %s2064_s27 = smov 24   ;;  %vm1118_vm9 = vcmask 191616   ;;  %vm1247_vm10 = vcmask 257216   ;;  %s2632_s11 = sld [smem:[#allocation26_spill]] }
  0xb9   : > { %v795_v49 = vsel %vm744_vm5, 16843009, %v2061_v48  ;;  %s2633_s10 = sld [smem:[#allocation21_spill]]  ;;  %s2634_s28 = sld [smem:[#allocation27_spill]] }
  0xba   : > { %1591 = vmatpush3.bf16.msra.mxu0 %v1778_v2  ;;  %1599 = vmatpush3.bf16.msra.mxu1 %v1782_v8  ;;  %v796_v50 = vunpack.c.0.s8 %v795_v49  ;;  %s525_s0 = scalar_lea.vmem [#allocation14], %s1508_s14  ;;  %s1349_s30 = scalar_lea.sflag [#allocation7], %s2377_s2 }
  0xbb   : > { %1604 = vmatprep.subr.bf16.mxu0 %v2056_v0  ;;  %1612 = vmatprep.subr.bf16.mxu1 %v2056_v0  ;;  %p2637_p2 = scmp.ne.s32.totalorder %s2619_s9, 0  ;;  %s2065_s14 = smov [#allocation14]  }
  0xbc   : > { %v1518_v29 = vld [vmem:[%s2629_s13] ss:$0 sm:$0xff]  ;;  %vm2474_vm6 = vcmp.ne.s32.totalorder %v796_v50, 0  ;;  %s1363_s13 = sshll.u32 %s525_s0, 4  ;;  %s2534_s13 = int_to_ptr.vmem [resolvable:$true] %s1363_s13 }
  0xbd   : > { %1593 = vmatmul.mubr.msk.bf16.vlgmr.msra.gmra.mrb[0].mxu0 %vm559_vm1, %v535_v5  ;;  %1601 = vmatmul.mubr.msk.bf16.vlgmr.msra.gmra.mrb[0].mxu1 %vm559_vm1, %v535_v5 }
  0xbe   : > { %1605 = vmatpush3.bf16.msra.mxu0 %v1779_v4  ;;  %1608 = vmatprep.mubr.msk.bf16.mxu0 %vm2057_vm0, %v2056_v0 }
  0xbf   : > { %1606 = vmatprep.subr.bf16.mxu0 %v2056_v0  ;;  %1614 = vmatprep.mubr.msk.bf16.mxu1 %vm2057_vm0, %v2056_v0  ;;  %s1554_s12 = sshll.u32 %s2633_s10, 7  ;;  %s1957_s10 = sshll.u32 %s2065_s14, 4  ;;  %s1958_s10 = int_to_ptr.vmem [resolvable:$false] %s1957_s10 }
  0xc0   : > { %s1959_s20 = scalar_lea.vmem %s1958_s10, 256  ;;  %p1960_p1 = scmp.lt.s32.totalorder %s2534_s13, %s1958_s10 }
  0xc2   : > { %1607 = vmatpush3.bf16.msra.mxu0 %v1780_v6 }
  0xc3   : > { %1618 = vmatprep.subr.bf16.mxu0 %v2056_v0 }
  0xc5   : > { %1609 = vmatmul.mubr.msk.bf16.vlgmr.msra.gmra.mrb[4].mxu0 %vm559_vm1, %v535_v5 }
  0xc6   : > { %1620 = vmatprep.mubr.msk.bf16.mxu0 %vm2057_vm0, %v2056_v0 }
 0x190   : > { %v597_v10 = vpop.f32.mrb[0].mxu0  ;;  %v660_v30 = vpop.f32.mrb[0].mxu1 }
 0x191   : > { %v598_v11 = vadd.f32 %v1514_v9, %v597_v10  ;;  %v1594_v12 = vpop.f32.mrb[1].mxu0  ;;  %v661_v31 = vadd.f32 %v1518_v29, %v660_v30  ;;  %v1602_v32 = vpop.f32.mrb[1].mxu1 }
 0x192   : > { %v600_v13 = vpop.f32.mrb[2].mxu0  ;;  %v663_v33 = vpop.f32.mrb[2].mxu1 }
 0x193   : > { %v666_v14 = vpack.c.bf16 %v598_v11, %v598_v11  ;;  %v1595_v15 = vpop.f32.mrb[3].mxu0  ;;  %v669_v34 = vpack.c.bf16 %v661_v31, %v661_v31  ;;  %v1603_v35 = vpop.f32.mrb[3].mxu1 }
 0x195   : > { %668 = vst.msk [vmem:[#allocation2] sm:$0xf] %vm667_vm2, %v666_v14  ;;  %670 = vst.msk [vmem:[#allocation3] sm:$0xf] %vm667_vm2, %v669_v34 }
 0x198   : > { %v735_v17 = vpop.f32.mrb[4].mxu0 }
 0x199   : > { %v736_v18 = vadd.f32 %v1522_v16, %v735_v17  ;;  %v1610_v19 = vpop.f32.mrb[5].mxu0 }
 0x19a   : > { %v738_v20 = vpop.f32.mrb[6].mxu0 }
 0x19b   : > { %v741_v21 = vmul.f32 0.35355338, %v736_v18  ;;  %v1611_v22 = vpop.f32.mrb[7].mxu0 }
 0x19c   : > { %v745_v23 = vld [vmem:[#allocation2] sm:$0xf]  ;;  %v746_v36 = vld [vmem:[#allocation3] sm:$0xf] }
 0x19d   : > { %v1783_v24 = vld [vmem:[#allocation2] ss:$0 sps:$4 sm:$0xff]   ;;  %v752_v25 = vsel %vm747_vm3, %v745_v23, 0  ;;  %v742_v27 = vpack.c.bf16 %v741_v21, %v741_v21  ;;  %v816_v37 = vsel %vm814_vm4, %v746_v36, 0  ;;  %v1786_v23 = vld [vmem:[#allocation3] ss:$0 sps:$4 sm:$0xff]  }
 0x19e   : > { %v1784_v26 = vld [vmem:[#allocation2] ss:$0 sps:$4 sm:$0xff]   ;;  %1613 = vmatpush3.bf16.xpose.msra.mxu1 %v752_v25  ;;  %998 = vrot.lane.b32.xlu1 %v1783_v24, %s2058_s19 }
 0x19f   : > { %869 = vrot.lane.b32.xlu0 %v1784_v26, %s2059_s18  ;;  %1624 = vmatprep.subr.bf16.mxu1 %v2056_v0  ;;  %v1785_v28 = vld [vmem:[#allocation2] ss:$0 sps:$4 sm:$0xff]  }
 0x1a0   : > { %1619 = vmatpush3.bf16.msra.mxu0 %v816_v37 }
 0x1a1   : > { %1630 = vmatprep.subr.bf16.mxu0 %v2056_v0 }
 0x1a2   : > { %993 = vrot.lane.b32.xlu1 %v742_v27, %s2058_s19 }
 0x1a3   : > { %864 = vrot.lane.b32.xlu0 %v742_v27, %s2059_s18 }
 0x1a5   : > { %1615 = vmatmul.mubr.msk.bf16.vlgmr.msra.gmra.mrb[4].mxu1 %vm747_vm3, %v742_v27 }
 0x1a6   : > { %1122 = vrot.lane.b32.xlu1 %v742_v27, %s2060_s17  ;;  %1626 = vmatprep.mubr.msk.bf16.mxu1 %vm2057_vm0, %v2056_v0 }
 0x1a7   : > { %1127 = vrot.lane.b32.xlu0 %v1785_v28, %s2060_s17 }
 0x210   : > { %v999_v40 = vpop.permute.xlu1 %998 }
 0x211   : > { %v870_v38 = vpop.permute.xlu0 %869  ;;  %v1004_v42 = vsel %vm747_vm3, %v999_v40, 0 }
 0x212   : > { %v875_v39 = vsel %vm747_vm3, %v870_v38, 0 }
 0x213   : > { %1625 = vmatpush3.bf16.xpose.msra.mxu1 %v875_v39  ;;  %v1787_v39 = vld [vmem:[#allocation3] ss:$0 sps:$4 sm:$0xff]  }
 0x214   : > { %1636 = vmatprep.subr.bf16.mxu1 %v2056_v0  ;;  %v994_v44 = vpop.permute.xlu1 %993 }
 0x215   : > { %v865_v41 = vpop.permute.xlu0 %864 }
 0x218   : > { %v1123_v46 = vpop.permute.xlu1 %1122 }
 0x219   : > { %v1128_v43 = vpop.permute.xlu0 %1127 }
 0x21a   : > { %1627 = vmatmul.mubr.msk.bf16.vlgmr.msra.gmra.mrb[8].mxu1 %vm747_vm3, %v865_v41  ;;  %v1133_v45 = vsel %vm747_vm3, %v1128_v43, 0  ;;  %v1788_v43 = vld [vmem:[#allocation3] ss:$0 sps:$4 sm:$0xff]  }
 0x21b   : > { %1637 = vmatpush3.bf16.xpose.msra.mxu1 %v1004_v42  ;;  %1638 = vmatprep.mubr.msk.bf16.mxu1 %vm2057_vm0, %v2056_v0 }
 0x21c   : > { %1648 = vmatprep.subr.bf16.mxu1 %v2056_v0 }
 0x222   : > { %1639 = vmatmul.mubr.msk.bf16.vlgmr.msra.gmra.mrb[12].mxu1 %vm747_vm3, %v994_v44 }
 0x223   : > { %1649 = vmatpush3.bf16.xpose.msra.mxu1 %v1133_v45  ;;  %1650 = vmatprep.mubr.msk.bf16.mxu1 %vm2057_vm0, %v2056_v0 }
 0x224   : > { %1660 = vmatprep.subr.bf16.mxu1 %v2056_v0 }
 0x22a   : > { %1651 = vmatmul.mubr.msk.bf16.vlgmr.msra.gmra.mrb[16].mxu1 %vm747_vm3, %v1123_v46 }
 0x22b   : > { %1664 = vmatprep.mubr.msk.bf16.mxu1 %vm2057_vm0, %v2056_v0 }
 0x278   : > { %v788_v51 = vpop.f32.mrb[4].mxu1 }
 0x279   : > { %v1527_v53 = vadd.f32 -10000.0, %v788_v51  ;;  %v1616_v54 = vpop.f32.mrb[5].mxu1 }
 0x27a   : > { %v791_v55 = vpop.f32.mrb[6].mxu1 }
 0x27b   : > { %v1617_v56 = vpop.f32.mrb[7].mxu1  ;;  %v798_v57 = vsel %vm2474_vm6, %v788_v51, %v1527_v53 }
 0x27c   : > { %v799_v58 = vsel %vm747_vm3, %v798_v57, -inf }
 0x27d   : > { %800 = vmax.xlane.f32.xlu0 %v799_v58 }
 0x2ed   : > { %v911_v59 = vpop.f32.mrb[8].mxu1 }
 0x2ee   : > { %v1531_v60 = vadd.f32 -10000.0, %v911_v59  ;;  %v1628_v61 = vpop.f32.mrb[9].mxu1 }
 0x2ef   : > { %v914_v62 = vpop.f32.mrb[10].mxu1 }
 0x2f0   : > { %v1629_v63 = vpop.f32.mrb[11].mxu1  ;;  %v918_v1 = vsel %vm2474_vm6, %v911_v59, %v1531_v60 }
 0x2f1   : > { %v919_v2 = vsel %vm747_vm3, %v918_v1, -inf }
 0x2f2   : > { %920 = vmax.xlane.f32.xlu1 %v919_v2 }
 0x2f5   : > { %v1040_v4 = vpop.f32.mrb[12].mxu1 }
 0x2f6   : > { %v1537_v5 = vadd.f32 -10000.0, %v1040_v4  ;;  %v1640_v6 = vpop.f32.mrb[13].mxu1 }
 0x2f7   : > { %v1043_v7 = vpop.f32.mrb[14].mxu1 }
 0x2f8   : > { %v1641_v8 = vpop.f32.mrb[15].mxu1  ;;  %v1047_v9 = vsel %vm2474_vm6, %v1040_v4, %v1537_v5 }
 0x2f9   : > { %v1048_v10 = vsel %vm747_vm3, %v1047_v9, -inf }
 0x2fa   : > { %1049 = vmax.xlane.f32.xlu0 %v1048_v10 }
 0x2fd   : > { %v1169_v11 = vpop.f32.mrb[16].mxu1 }
 0x2fe   : > { %v1543_v12 = vadd.f32 -10000.0, %v1169_v11  ;;  %v1652_v13 = vpop.f32.mrb[17].mxu1 }
 0x2ff   : > { %v1172_v14 = vpop.f32.mrb[18].mxu1  ;;  %v1790_v13 = vld [vmem:[#allocation13 + $0x8] sm:$0xff]  }
 0x300   : > { %v1653_v15 = vpop.f32.mrb[19].mxu1  ;;  %v1176_v16 = vsel %vm2474_vm6, %v1169_v11, %v1543_v12  ;;  %v1789_v11 = vld [vmem:[#allocation13] sm:$0xff]  }
 0x301   : > { %v1177_v17 = vsel %vm747_vm3, %v1176_v16, -inf  ;;  %1661 = vmatpush3.bf16.msra.mxu1 %v1789_v11 }
 0x302   : > { %1178 = vmax.xlane.f32.xlu0 %v1177_v17  ;;  %1662 = vmatprep.subr.bf16.mxu1 %v2056_v0 }
 0x305   : > { %1663 = vmatpush3.bf16.msra.mxu1 %v1790_v13 }
 0x30a   : > { %v801_v18 = vpop.xlane.xlu0 %800 }
 0x30b   : > { %v802_v19 = vsub.f32 %v798_v57, %v801_v18 }
 0x30d   : > { %v803_v20 = vmul.f32 1.442695, %v802_v19 }
 0x30f   : > { %1791 = vpow2.f32 %v803_v20 }
 0x319   : > { %v1792_v21 = vpop.eup %1791 }
 0x31a   : > { %v805_v22 = vsel %vm747_vm3, %v1792_v21, 0.0 }
 0x31b   : > { %806 = vadd.xlane.f32.xlu1 %v805_v22 }
 0x32c   : > { %934 = vrot.lane.b32.xlu1 %v1786_v23, %s2059_s18 }
 0x37f   : > { %v921_v24 = vpop.xlane.xlu1 %920 }
 0x380   : > { %v922_v25 = vsub.f32 %v918_v1, %v921_v24 }
 0x382   : > { %v923_v26 = vmul.f32 1.442695, %v922_v25 }
 0x384   : > { %1793 = vpow2.f32 %v923_v26  ;;  %v1547_v26 = vld [vmem:[%s2632_s11] ss:$0 sm:$0xff]  ;;  %s1953_s11 = scalar_lea.vmem %s2534_s13, 128 }
 0x385   : > { %p1954_p0 = scmp.ne.s32.totalorder %s2534_s13, %s1953_s11  ;;  %p1961_p13 = scmp.lt.s32.totalorder %s1959_s20, %s1953_s11 }
 0x387   : > { %v1050_v27 = vpop.xlane.xlu0 %1049  ;;  %p1955_p4 = pnand %p1954_p0, %p2637_p2  ;;  %p1962_p3 = por %p1961_p13, %p1960_p1 }
 0x388   : > { %v1051_v28 = vsub.f32 %v1047_v9, %v1050_v27 }
 0x389   : > { %p1956_p8 = pneg %p1955_p4 }
 0x38a   : > { %v1052_v29 = vmul.f32 1.442695, %v1051_v28 }
 0x38b   : > { %p1963_p5 = pnand %p1962_p3, %p1956_p8 }
 0x38c   : > { %1795 = vpow2.f32 %v1052_v29 }
 0x38e   : > { %v1794_v30 = vpop.eup %1793 }
 0x38f   : > { %v1179_v31 = vpop.xlane.xlu0 %1178  ;;  %v925_v32 = vsel %vm747_vm3, %v1794_v30, 0.0 }
 0x390   : > { %v1180_v33 = vsub.f32 %v1176_v16, %v1179_v31  ;;  %926 = vadd.xlane.f32.xlu0 %v925_v32 }
 0x392   : > { %v1181_v34 = vmul.f32 1.442695, %v1180_v33 }
 0x394   : > { %1797 = vpow2.f32 %v1181_v34 }
 0x396   : > { %v1796_v35 = vpop.eup %1795 }
 0x397   : > { %v1054_v36 = vsel %vm747_vm3, %v1796_v35, 0.0 }
 0x398   : > { %1055 = vadd.xlane.f32.xlu1 %v1054_v36 }
 0x39e   : > { %v1798_v37 = vpop.eup %1797 }
 0x39f   : > { %v1183_v38 = vsel %vm747_vm3, %v1798_v37, 0.0 }
 0x3a0   : > { %1184 = vadd.xlane.f32.xlu0 %v1183_v38 }
 0x3a8   : > { %v807_v40 = vpop.xlane.xlu1 %806 }
 0x3a9   : > { %1799 = vrcp.f32 %v807_v40  ;;  %1192 = vrot.lane.b32.xlu1 %v1787_v39, %s2060_s17  ;;  %s2635_s17 = sld [smem:[#allocation28_spill]] }
 0x3ac   : > { %v935_v44 = vpop.permute.xlu1 %934 }
 0x3ad   : > { %v940_v46 = vsel %vm814_vm4, %v935_v44, 0 }
 0x3af   : > { %v1552_v44 = vld [vmem:[%s2635_s17] ss:$0 sm:$0xff] }
 0x3b3   : > { %v1800_v41 = vpop.eup %1799 }
 0x3b4   : > { %v809_v42 = vmul.f32 %v1800_v41, %v1792_v21 }
 0x3b6   : > { %1063 = vrot.lane.b32.xlu0 %v1788_v43, %s2058_s19  ;;  %v810_v45 = vpack.c.bf16 %v809_v42, %v809_v42 }
 0x3b8   : > { %1621 = vmatmul.mubr.msk.bf16.vlgmr.msra.gmra.mrb[8].mxu0 %vm747_vm3, %v810_v45 }
 0x3b9   : > { %1631 = vmatpush3.bf16.msra.mxu0 %v940_v46  ;;  %1632 = vmatprep.mubr.msk.bf16.mxu0 %vm2057_vm0, %v2056_v0 }
 0x3ba   : > { %1642 = vmatprep.subr.bf16.mxu0 %v2056_v0 }
 0x41d   : > { %v927_v47 = vpop.xlane.xlu0 %926 }
 0x41e   : > { %1801 = vrcp.f32 %v927_v47 }
 0x425   : > { %v1056_v48 = vpop.xlane.xlu1 %1055 }
 0x426   : > { %1803 = vrcp.f32 %v1056_v48 }
 0x428   : > { %v1802_v49 = vpop.eup %1801 }
 0x429   : > { %v929_v50 = vmul.f32 %v1802_v49, %v1794_v30  ;;  %v1193_v57 = vpop.permute.xlu1 %1192 }
 0x42a   : > { %v1198_v59 = vsel %vm814_vm4, %v1193_v57, 0 }
 0x42b   : > { %v930_v51 = vpack.c.bf16 %v929_v50, %v929_v50 }
 0x42d   : > { %1633 = vmatmul.mubr.msk.bf16.vlgmr.msra.gmra.mrb[12].mxu0 %vm747_vm3, %v930_v51  ;;  %v1185_v52 = vpop.xlane.xlu0 %1184 }
 0x42e   : > { %1805 = vrcp.f32 %v1185_v52  ;;  %1644 = vmatprep.mubr.msk.bf16.mxu0 %vm2057_vm0, %v2056_v0 }
 0x430   : > { %v1804_v53 = vpop.eup %1803 }
 0x431   : > { %v1058_v54 = vmul.f32 %v1804_v53, %v1796_v35  ;;  %v1064_v55 = vpop.permute.xlu0 %1063 }
 0x432   : > { %v1069_v56 = vsel %vm814_vm4, %v1064_v55, 0 }
 0x433   : > { %1643 = vmatpush3.bf16.msra.mxu0 %v1069_v56  ;;  %v1059_v58 = vpack.c.bf16 %v1058_v54, %v1058_v54 }
 0x434   : > { %1654 = vmatprep.subr.bf16.mxu0 %v2056_v0 }
 0x436   : > { %1645 = vmatmul.mubr.msk.bf16.vlgmr.msra.gmra.mrb[16].mxu0 %vm747_vm3, %v1059_v58 }
 0x437   : > { %1655 = vmatpush3.bf16.msra.mxu0 %v1198_v59  ;;  %1656 = vmatprep.mubr.msk.bf16.mxu0 %vm2057_vm0, %v2056_v0 }
 0x438   : > { %v1806_v60 = vpop.eup %1805 }
 0x439   : > { %v1187_v61 = vmul.f32 %v1806_v60, %v1798_v37 }
 0x43b   : > { %v1188_v62 = vpack.c.bf16 %v1187_v61, %v1187_v61 }
 0x43e   : > { %1657 = vmatmul.mubr.msk.bf16.vlgmr.msra.gmra.mrb[20].mxu0 %vm747_vm3, %v1188_v62 }
 0x48b   : > { %v852_v63 = vpop.f32.mrb[8].mxu0 }
 0x48c   : > { %v858_v1 = vpack.c.bf16 %v852_v63, %v852_v63  ;;  %v1622_v2 = vpop.f32.mrb[9].mxu0 }
 0x48d   : > { %v855_v4 = vpop.f32.mrb[10].mxu0 }
 0x48e   : > { %860 = vst.msk [vmem:[#allocation4] sm:$0xf] %vm859_vm7, %v858_v1  ;;  %v1623_v5 = vpop.f32.mrb[11].mxu0 }
 0x500   : > { %v976_v6 = vpop.f32.mrb[12].mxu0 }
 0x501   : > { %v1557_v7 = vpack.c.bf16 %v976_v6, %v976_v6  ;;  %v1634_v8 = vpop.f32.mrb[13].mxu0 }
 0x502   : > { %v979_v9 = vpop.f32.mrb[14].mxu0 }
 0x503   : > { %986 = vrot.lane.b32.xlu1 %v1557_v7, %s2062_s15  ;;  %v1635_v10 = vpop.f32.mrb[15].mxu0 }
 0x509   : > { %v1105_v12 = vpop.f32.mrb[16].mxu0 }
 0x50a   : > { %v1558_v14 = vpack.c.bf16 %v1105_v12, %v1105_v12  ;;  %v1646_v15 = vpop.f32.mrb[17].mxu0 }
 0x50b   : > { %v1108_v16 = vpop.f32.mrb[18].mxu0 }
 0x50c   : > { %1115 = vrot.lane.b32.xlu0 %v1558_v14, %s2063_s21  ;;  %v1647_v17 = vpop.f32.mrb[19].mxu0 }
 0x511   : > { %v1234_v18 = vpop.f32.mrb[20].mxu0 }
 0x512   : > { %v1559_v19 = vpack.c.bf16 %v1234_v18, %v1234_v18  ;;  %v1658_v20 = vpop.f32.mrb[21].mxu0 }
 0x513   : > { %v1237_v21 = vpop.f32.mrb[22].mxu0 }
 0x514   : > { %1244 = vrot.lane.b32.xlu1 %v1559_v19, %s2064_s27  ;;  %v1659_v22 = vpop.f32.mrb[23].mxu0  ;;  %s2636_s27 = sld [smem:[#allocation29_spill]] }
 0x51a   : > { %s2532_s29 = scalar_lea.hbm %s2636_s27, %s1554_s12 }
 0x575   : > { %v987_v23 = vpop.permute.xlu1 %986 }
 0x576   : > { %990 = vst.msk [vmem:[#allocation4] sm:$0xf] %vm989_vm8, %v987_v23 }
 0x57e   : > { %v1116_v24 = vpop.permute.xlu0 %1115 }
 0x57f   : > { %1119 = vst.msk [vmem:[#allocation4] sm:$0xf] %vm1118_vm9, %v1116_v24 }
 0x586   : > { %v1245_v0 = vpop.permute.xlu1 %1244 }
 0x587   : > { %1248 = vst.msk [vmem:[#allocation4] sm:$0xf] %vm1247_vm10, %v1245_v0 }
 0x58e   : > { %v1249_v25 = vld [vmem:[#allocation4] sm:$0xf] }
 0x58f   : > { %1665 = vmatmul.mubr.msk.bf16.vlgmr.msra.gmra.mrb[20].mxu1 %vm559_vm1, %v1249_v25 }
 0x662   : > { %v1310_v27 = vpop.f32.mrb[20].mxu1 }
 0x663   : > { %v1311_v28 = vadd.f32 %v1547_v26, %v1310_v27  ;;  %v1666_v29 = vpop.f32.mrb[21].mxu1 }
 0x664   : > { %v1313_v30 = vpop.f32.mrb[22].mxu1 }
 0x665   : > { %v1667_v31 = vpop.f32.mrb[23].mxu1  ;;  %v1316_v32 = vadd.f32 %v1311_v28, %v2409_v3  ;;  %v1551_v3 = vld [vmem:[%s2634_s28] ss:$0 sm:$0xff] }
 0x667   : > { %v1317_v33 = vsel %vm559_vm1, %v1316_v32, 0.0 }
 0x668   : > { %1318 = vadd.xlane.f32.xlu0 %v1317_v33 }
 0x6f5   : > { %v1319_v34 = vpop.xlane.xlu0 %1318 }
 0x6f6   : > { %v1321_v35 = vmul.f32 0.03125, %v1319_v34 }
 0x6f8   : > { %v1322_v36 = vsub.f32 %v1316_v32, %v1321_v35 }
 0x6fa   : > { %v1323_v37 = vmul.f32 %v1322_v36, %v1322_v36 }
 0x6fc   : > { %v1324_v38 = vsel %vm559_vm1, %v1323_v37, 0.0 }
 0x6fd   : > { %1325 = vadd.xlane.f32.xlu1 %v1324_v38 }
 0x78a   : > { %v1326_v39 = vpop.xlane.xlu1 %1325 }
 0x78b   : > { %v1327_v40 = vmul.f32 0.03125, %v1326_v39 }
 0x78d   : > { %v1328_v41 = vadd.f32 1e-12, %v1327_v40 }
 0x78f   : > { %1807 = vrsqrt.f32 %v1328_v41 }
 0x799   : > { %v1808_v42 = vpop.eup %1807 }
 0x79a   : > { %v1330_v43 = vmul.f32 %v1808_v42, %v1322_v36 }
 0x79c   : > { %v1338_v45 = vmul.f32 %v1551_v3, %v1330_v43 }
 0x79e   : > { %v1346_v46 = vadd.f32 %v1552_v44, %v1338_v45 }
 0x7a0   : > { %1347 = vst.msk [vmem:[%s525_s0] sm:$0xff] %vm559_vm1, %v1346_v46 }
 0x7a1   : > { %1966 = shalt.err (!%p1963_p5)
}
 0x7a2   : > { %s1967_s2 = scalar_lea.hbm %s2532_s29, 128  ;;  %s1971_s19 = scalar_lea.hbm %s2636_s27, 256 }
 0x7a3   : > { %p1968_p6 = scmp.ne.s32.totalorder %s2532_s29, %s1967_s2  ;;  %p1972_p12 = scmp.lt.u32.totalorder %s2532_s29, %s2636_s27 }
 0x7a4   : > { %p1973_p11 = scmp.lt.u32.totalorder %s1971_s19, %s1967_s2  ;;  %p1975_p0 = scmp.lt.u32.totalorder %s1967_s2, %s2532_s29 }
 0x7a5   : > { %p1969_p10 = pnand %p1968_p6, %p2637_p2 }
 0x7a6   : > { %p1974_p9 = por %p1973_p11, %p1972_p12 }
 0x7a7   : > { %p1970_p7 = pneg %p1969_p10 }
 0x7a8   : > { %p1976_p4 = por %p1975_p0, %p1974_p9 }
 0x7aa   : > { %p1977_p8 = pnand %p1976_p4, %p1970_p7 }
 0x7ac   : > { %1980 = shalt.err (!%p1977_p8)
}
 0x7ad   : > { %1684 = dma.vmem_to_hbm [thread:$0]  (%p2637_p2), %s2534_s13, 128, %s2532_s29, %s1349_s30  }
 0x7ae PF: > { %s2638_s12 = sld [smem:[#allocation20_spill]]  ;;  %s2639_s0 = sld [smem:[#allocation22_spill]] }
 0x7af   : > { %p2641_p13 = scmp.ge.s32.totalorder %s2047_s26, 2 }
 0x7b4   : > { %s1375_s15 = sand.u32 1, %s2638_s12   ;;  %p2640_p1 = scmp.ne.s32.totalorder %s2639_s0, 0 }
 0x7b5   : > { %s1376_s21 = scalar_lea.sflag [#allocation7], %s1375_s15 }
 0x7b6   : > { %p1704_p3 = pnand %p2641_p13, %p2640_p1 }
 0x7b8   : > { %2022 = dma.done.wait (!%p1704_p3), %s1376_s21, 128  }
 0x7b9   : > { %2024 = vsyncadd (!%p1704_p3), %s1376_s21, 4294967168  ;;  %s32_s26 = sadd.s32 1, %s2047_s26   ;;  %s2642_s21 = smov %s2031_s22 }
 0x7ba   : > { %p29_p5 = scmp.ge.s32.totalorder %s32_s26, 4   ;;  %s2643_s22 = smov %s2035_s23 }
 0x7bb   : > { %s2644_s23 = smov %s2302_s24  ;;  %s2645_s24 = smov %s2043_s25 }
 0x7bc   : > { %s2646_s25 = smov %s2648_s16  ;;  %31 = sbr.rel (!%p29_p5) target bundleno = 17 (0x11), region = 143 }
 0x7c3   :  { %1381 = vsyncpa [#allocation6], 1 }
 0x7c4   :  { %1383 = vsyncpa [#allocation6 + $0x1], 1 }
 0x7c5   :  { %1384 = vsyncpa [#allocation9], 1 }
 0x7c6   :  { %1386 = vsyncpa [#allocation9 + $0x1], 1 }
 0x7c7   :  { %1387 = vsyncpa [#allocation12], 1 }
 0x7c8   :  { %1388 = vsyncpa [#allocation7], 1 }
 0x7c9   :  { %1390 = vsyncpa [#allocation7 + $0x1], 1 }

</bundles_post_ra>
